<compile_context>
chip_gen: v5e
topology: v5e:2x2
jax: 0.10.0
libtpu: 0.0.40
codegen_flags: <defaults>
</compile_context>

<pallas_src>
import functools

import jax
import jax.numpy as jnp
from jax.experimental import pallas as pl
from jax.experimental.pallas import tpu as pltpu


def _round_up(x, m):
    return ((x + m - 1) // m) * m


# ---------------------------------------------------------------------------
# Kernels
# ---------------------------------------------------------------------------

def _curve_matmul_kernel(coeffs_ref, x_ref, w_ref, b_ref, o_ref, *,
                         nbw, nbb, dot_dtype):
    """Tiled matmul with curve interpolation fused into the prologue.

    coeffs_ref: (nb,)          f32 SMEM   curve coefficients (scalar reads)
    x_ref:      (tm, tk)       dot_dtype  VMEM
    w_ref:      (nbw, tk, tn)  dot_dtype  VMEM  (pre-transposed K x N, lane-dense)
    b_ref:      (nbb, 1, tn)   f32        VMEM
    o_ref:      (tm, tn)       f32        VMEM  output; doubles as the K-loop
                                          accumulator (block index (i, j) is
                                          constant across the k grid axis)
    """
    k = pl.program_id(2)

    @pl.when(k == 0)
    def _init():
        o_ref[...] = jnp.zeros_like(o_ref)

    # Interpolate the weight tile on the curve (a few VPU ops), then hit the MXU.
    # Interpolation happens in f32 (SMEM scalar * tile promotes), cast once for
    # the dot.  For the materialized path nbw == 1 and coeffs == [1.0].
    w_t = coeffs_ref[0] * w_ref[0]
    for j in range(1, nbw):
        w_t = w_t + coeffs_ref[j] * w_ref[j]

    o_ref[...] += jnp.dot(x_ref[...], w_t.astype(dot_dtype),
                          preferred_element_type=jnp.float32)

    @pl.when(k == pl.num_programs(2) - 1)
    def _finalize():
        b_t = coeffs_ref[0] * b_ref[0]                       # (1, tn) f32
        for j in range(1, nbb):
            b_t = b_t + coeffs_ref[j] * b_ref[j]
        o_ref[...] += b_t                                    # broadcast over rows


def _interp_weight_kernel(coeffs_ref, w_ref, o_ref, *, num_bends):
    """One-shot materialization of weight_t = sum_j coeffs[j] * W_j (padded K x N)."""
    w_t = coeffs_ref[0] * w_ref[0]
    for j in range(1, num_bends):
        w_t = w_t + coeffs_ref[j] * w_ref[j]
    o_ref[0] = w_t.astype(o_ref.dtype)


# ---------------------------------------------------------------------------
# Wrappers
# ---------------------------------------------------------------------------

def prepare_curve_linear_params(weights, biases, *, tn=512, tk=1024,
                                use_bf16=False):
    """Lay out the bend parameters once (transpose to K x N, pad to tile multiples).

    Hoists the per-call transpose/pad of the (num_bends, out, in) weight slab out
    of the forward path (done at parameter-init time).  Returns a dict consumed by
    curve_linear().
    """
    weights = jnp.asarray(weights, jnp.float32)
    num_bends, N, K = weights.shape
    if biases is None:
        biases = jnp.zeros((num_bends, N), jnp.float32)
    else:
        biases = jnp.asarray(biases, jnp.float32)
        assert biases.shape == (num_bends, N)

    # Last block dims multiples of 128, second-to-last multiples of 8 (or full dim).
    tk = min(tk, _round_up(K, 128))
    tn = min(tn, _round_up(N, 128))
    Kp, Np = _round_up(K, tk), _round_up(N, tn)

    dot_dtype = jnp.bfloat16 if use_bf16 else jnp.float32

    # Lane-dense layout: weights stored (num_bends, K, N) so the matmul output's
    # last dim (N) sits on the 128-lane axis.
    w_kn = jnp.transpose(weights, (0, 2, 1))
    w_p = jnp.pad(w_kn, ((0, 0), (0, Kp - K), (0, Np - N))).astype(dot_dtype)
    b_p = jnp.pad(biases.reshape(num_bends, 1, N), ((0, 0), (0, 0), (0, Np - N)))

    return dict(w=w_p, b=b_p, in_features=K, out_features=N,
                num_bends=num_bends, tk=tk, tn=tn, dot_dtype=dot_dtype)


def _materialize_weight_t(coeffs_t, w_p, tk, tn):
    """Materialize the interpolated weight once (HBM-bound elementwise combine)."""
    num_bends, Kp, Np = w_p.shape
    return pl.pallas_call(
        functools.partial(_interp_weight_kernel, num_bends=num_bends),
        out_shape=jax.ShapeDtypeStruct((1, Kp, Np), w_p.dtype),
        grid_spec=pltpu.PrefetchScalarGridSpec(
            num_scalar_prefetch=0,
            grid=(Kp // tk, Np // tn),
            in_specs=[
                pl.BlockSpec(memory_space=pltpu.MemorySpace.SMEM),          # coeffs
                pl.BlockSpec((num_bends, tk, tn), lambda i, j: (0, i, j)),  # W
            ],
            out_specs=pl.BlockSpec((1, tk, tn), lambda i, j: (0, i, j)),
        ),
        compiler_params=pltpu.CompilerParams(
            dimension_semantics=("parallel", "parallel"),
            vmem_limit_bytes=64 * 1024 * 1024),
    )(coeffs_t, w_p)


def curve_linear(x, params, coeffs_t, *, tm=512, materialize=None,
                 materialize_threshold=2):
    """Forward of the curve `Linear` module: x @ weight_t.T + bias_t.

    Args:
      x:        (..., in_features) input.
      params:   output of prepare_curve_linear_params().
      coeffs_t: (num_bends,) curve coefficients.
      tm:       row tile.  (512 default; on v7x keep Mp/tm and Np/tn >= 2 so both
                TensorCores get work under the "parallel" grid axes.)
      materialize: None = auto (materialize weight_t once when M spans more than
                `materialize_threshold` row blocks), or force True/False.
    """
    w_p, b_p = params["w"], params["b"]
    K, N = params["in_features"], params["out_features"]
    num_bends, tk, tn = params["num_bends"], params["tk"], params["tn"]
    dot_dtype = params["dot_dtype"]
    _, Kp, Np = w_p.shape

    coeffs_t = jnp.asarray(coeffs_t, jnp.float32)
    assert coeffs_t.shape == (num_bends,)

    x = jnp.asarray(x, jnp.float32)
    assert x.shape[-1] == K
    lead_shape = x.shape[:-1]
    x2 = x.reshape(-1, K)
    M = x2.shape[0]

    tm = min(tm, _round_up(M, 8))
    Mp = _round_up(M, tm)
    x_p = jnp.pad(x2, ((0, Mp - M), (0, Kp - K))).astype(dot_dtype)

    num_m_blocks = Mp // tm
    if materialize is None:
        # Fused weight traffic: num_bends*K*N per row block.
        # Materialized:         num_bends*K*N once + K*N per row block.
        # For num_bends=3 the crossover is ~2 row blocks.
        materialize = (num_bends > 1) and (num_m_blocks > materialize_threshold)

    if materialize:
        w_call = _materialize_weight_t(coeffs_t, w_p, tk, tn)        # (1, Kp, Np)
        b_call = jnp.einsum("j,jrn->rn", coeffs_t, b_p)[None]        # (1, 1, Np)
        coeffs_call = jnp.ones((1,), jnp.float32)
        nbw = nbb = 1
    else:
        w_call, b_call, coeffs_call = w_p, b_p, coeffs_t
        nbw = nbb = num_bends

    kernel = functools.partial(_curve_matmul_kernel, nbw=nbw, nbb=nbb,
                               dot_dtype=dot_dtype)
    out_p = pl.pallas_call(
        kernel,
        out_shape=jax.ShapeDtypeStruct((Mp, Np), jnp.float32),
        grid_spec=pltpu.PrefetchScalarGridSpec(
            num_scalar_prefetch=0,
            grid=(Mp // tm, Np // tn, Kp // tk),
            in_specs=[
                # coeffs: whole array in SMEM (scalar reads, no VMEM tile / DMA).
                pl.BlockSpec(memory_space=pltpu.MemorySpace.SMEM),
                pl.BlockSpec((tm, tk), lambda i, j, k: (i, k)),            # x
                pl.BlockSpec((nbw, tk, tn), lambda i, j, k: (0, k, j)),    # W (K x N)
                pl.BlockSpec((nbb, 1, tn), lambda i, j, k: (0, 0, j)),     # b
            ],
            out_specs=pl.BlockSpec((tm, tn), lambda i, j, k: (i, j)),
        ),
        compiler_params=pltpu.CompilerParams(
            dimension_semantics=("parallel", "parallel", "arbitrary"),
            vmem_limit_bytes=64 * 1024 * 1024),
    )(coeffs_call, x_p, w_call, b_call)

    return out_p[:M, :N].reshape(*lead_shape, N)


def curve_l2(weights, biases, coeffs_t):
    """Mirror of the module's `self.l2` side-effect (sum of squares of the
    interpolated parameters).  Tiny reduction — plain jnp, no kernel needed."""
    coeffs_t = jnp.asarray(coeffs_t, jnp.float32)
    w_t = jnp.einsum("j,jnk->nk", coeffs_t, jnp.asarray(weights, jnp.float32))
    l2 = jnp.sum(w_t ** 2)
    if biases is not None:
        b_t = coeffs_t @ jnp.asarray(biases, jnp.float32)
        l2 = l2 + jnp.sum(b_t ** 2)
    return l2


# ---------------------------------------------------------------------------
# Demo / correctness check
# ---------------------------------------------------------------------------

if __name__ == "__main__":
    num_bends = 3                      # e.g. fix_points = [True, False, True]
    batch, in_features, out_features = 8, 32, 16

    key = jax.random.PRNGKey(0)
    kx, kw, kb = jax.random.split(key, 3)

    stdv = 1.0 / (in_features ** 0.5)
    x = jax.random.uniform(kx, (batch, in_features), jnp.float32, -1.0, 1.0)
    weights = jax.random.uniform(
        kw, (num_bends, out_features, in_features), jnp.float32, -stdv, stdv)
    biases = jax.random.uniform(kb, (num_bends, out_features), jnp.float32, -stdv, stdv)

    # coeffs_t from the PolyChain curve at t = 0.37 (tiny; plain jnp).
    t = jnp.float32(0.37)
    t_n = t * (num_bends - 1)
    coeffs_t = jnp.maximum(
        0.0, 1.0 - jnp.abs(t_n - jnp.arange(num_bends, dtype=jnp.float32)))

    # Pure-JAX reference.
    w_t = jnp.einsum("j,jnk->nk", coeffs_t, weights)
    b_t = coeffs_t @ biases
    ref = jnp.dot(x, w_t.T, precision=jax.lax.Precision.HIGHEST) + b_t
    ref_nb = jnp.dot(x, w_t.T, precision=jax.lax.Precision.HIGHEST)

    # 1) fused f32 path (params prepared once, outside the forward pass).
    params = prepare_curve_linear_params(weights, biases)
    out = jax.block_until_ready(curve_linear(x, params, coeffs_t))
    assert out.shape == (batch, out_features)
    assert jnp.allclose(out, ref, atol=1e-3, rtol=1e-3), (
        f"fused mismatch, max abs err = {jnp.max(jnp.abs(out - ref))}")

    # 2) materialized-weight path (large-M branch, forced here at small shapes).
    out_mat = jax.block_until_ready(curve_linear(x, params, coeffs_t, materialize=True))
    assert jnp.allclose(out_mat, ref, atol=1e-3, rtol=1e-3), (
        f"materialized mismatch, max abs err = {jnp.max(jnp.abs(out_mat - ref))}")

    # 3) bias=False path (bias_i registered as None in the PyTorch module).
    params_nb = prepare_curve_linear_params(weights, None)
    out_nb = jax.block_until_ready(curve_linear(x, params_nb, coeffs_t))
    assert jnp.allclose(out_nb, ref_nb, atol=1e-3, rtol=1e-3)

    # 4) optional bf16 storage/compute path (f32 interpolation + accumulation).
    params_bf16 = prepare_curve_linear_params(weights, biases, use_bf16=True)
    out_bf16 = jax.block_until_ready(curve_linear(x, params_bf16, coeffs_t))
    assert jnp.allclose(out_bf16, ref, atol=2e-2, rtol=2e-2), (
        f"bf16 mismatch, max abs err = {jnp.max(jnp.abs(out_bf16 - ref))}")

    # 5) l2 side-effect matches (plain jnp helper).
    l2 = jax.block_until_ready(curve_l2(weights, biases, coeffs_t))
    l2_ref = jnp.sum(w_t ** 2) + jnp.sum(b_t ** 2)
    assert jnp.allclose(l2, l2_ref, atol=1e-5, rtol=1e-5)

    print("KERNEL_OK")
</pallas_src>

<mosaic_0001>
module attributes {stable_mosaic.version = 11 : i64} {
  func.func @_curve_matmul_kernel(%arg0: i32, %arg1: i32, %arg2: i32, %arg3: memref<3xf32, #tpu.memory_space<smem>>, %arg4: memref<8x128xf32, #tpu.memory_space<vmem>>, %arg5: memref<3x128x128xf32, #tpu.memory_space<vmem>>, %arg6: memref<3x1x128xf32, #tpu.memory_space<vmem>>, %arg7: memref<8x128xf32, #tpu.memory_space<vmem>>) attributes {dimension_semantics = [#tpu.dimension_semantics<parallel>, #tpu.dimension_semantics<parallel>, #tpu.dimension_semantics<arbitrary>], iteration_bounds = array<i64: 1, 1, 1>, scalar_prefetch = 0 : i64, scratch_operands = 0 : i64, tpu.core_type = #tpu.core_type<tc>, window_params = [{transform_indices = @transform_0, window_bounds = array<i64: 3>}, {transform_indices = @transform_1, window_bounds = array<i64: 8, 128>}, {transform_indices = @transform_2, window_bounds = array<i64: 3, 128, 128>}, {transform_indices = @transform_3, window_bounds = array<i64: 3, 1, 128>}, {transform_indices = @transform_4, window_bounds = array<i64: 8, 128>}]} {
    %c0_i32 = arith.constant 0 : i32
    %0 = arith.cmpi eq, %arg2, %c0_i32 : i32
    %1 = arith.extui %0 : i1 to i32
    %c0_i32_0 = arith.constant 0 : i32
    %2 = arith.cmpi ne, %1, %c0_i32_0 : i32
    scf.if %2 {
      %cst_18 = arith.constant 0.000000e+00 : f32
      %28 = vector.broadcast %cst_18 : f32 to vector<8x128xf32>
      %c0_19 = arith.constant 0 : index
      %c0_20 = arith.constant 0 : index
      %29 = vector.load %arg7[%c0_19, %c0_20] : memref<8x128xf32, #tpu.memory_space<vmem>>, vector<8x128xf32>
      tpu.vector_store %arg7[%c0_19, %c0_20], %28 {strides = array<i32>} : memref<8x128xf32, #tpu.memory_space<vmem>>, vector<8x128xf32>,
    } else {
    }
    %c0 = arith.constant 0 : index
    %3 = memref.load %arg3[%c0] : memref<3xf32, #tpu.memory_space<smem>>
    %c0_1 = arith.constant 0 : index
    %c0_2 = arith.constant 0 : index
    %c0_3 = arith.constant 0 : index
    %4 = vector.load %arg5[%c0_1, %c0_2, %c0_3] : memref<3x128x128xf32, #tpu.memory_space<vmem>>, vector<1x128x128xf32>
    %5 = vector.shape_cast %4 : vector<1x128x128xf32> to vector<128x128xf32>
    %6 = vector.broadcast %3 : f32 to vector<128x128xf32>
    %7 = arith.mulf %6, %5 : vector<128x128xf32>
    %c1 = arith.constant 1 : index
    %8 = memref.load %arg3[%c1] : memref<3xf32, #tpu.memory_space<smem>>
    %c1_4 = arith.constant 1 : index
    %c0_5 = arith.constant 0 : index
    %c0_6 = arith.constant 0 : index
    %9 = vector.load %arg5[%c1_4, %c0_5, %c0_6] : memref<3x128x128xf32, #tpu.memory_space<vmem>>, vector<1x128x128xf32>
    %10 = vector.shape_cast %9 : vector<1x128x128xf32> to vector<128x128xf32>
    %11 = vector.broadcast %8 : f32 to vector<128x128xf32>
    %12 = arith.mulf %11, %10 : vector<128x128xf32>
    %13 = arith.addf %7, %12 : vector<128x128xf32>
    %c2 = arith.constant 2 : index
    %14 = memref.load %arg3[%c2] : memref<3xf32, #tpu.memory_space<smem>>
    %c2_7 = arith.constant 2 : index
    %c0_8 = arith.constant 0 : index
    %c0_9 = arith.constant 0 : index
    %15 = vector.load %arg5[%c2_7, %c0_8, %c0_9] : memref<3x128x128xf32, #tpu.memory_space<vmem>>, vector<1x128x128xf32>
    %16 = vector.shape_cast %15 : vector<1x128x128xf32> to vector<128x128xf32>
    %17 = vector.broadcast %14 : f32 to vector<128x128xf32>
    %18 = arith.mulf %17, %16 : vector<128x128xf32>
    %19 = arith.addf %13, %18 : vector<128x128xf32>
    %c0_10 = arith.constant 0 : index
    %c0_11 = arith.constant 0 : index
    %20 = vector.load %arg7[%c0_10, %c0_11] : memref<8x128xf32, #tpu.memory_space<vmem>>, vector<8x128xf32>
    %c0_12 = arith.constant 0 : index
    %c0_13 = arith.constant 0 : index
    %21 = vector.load %arg4[%c0_12, %c0_13] : memref<8x128xf32, #tpu.memory_space<vmem>>, vector<8x128xf32>
    %cst = arith.constant dense<0.000000e+00> : vector<8x128xf32>
    %22 = tpu.matmul %21, %19, %cst {dimension_numbers = #tpu.dot_dimension_numbers<[1], [0], [0], [1], [0, 0, 1, 1], [], []>} : vector<8x128xf32>, vector<128x128xf32>, vector<8x128xf32> -> vector<8x128xf32>
    %23 = arith.addf %20, %22 : vector<8x128xf32>
    %c0_14 = arith.constant 0 : index
    %c0_15 = arith.constant 0 : index
    %24 = vector.load %arg7[%c0_14, %c0_15] : memref<8x128xf32, #tpu.memory_space<vmem>>, vector<8x128xf32>
    tpu.vector_store %arg7[%c0_14, %c0_15], %23 {strides = array<i32>} : memref<8x128xf32, #tpu.memory_space<vmem>>, vector<8x128xf32>,
    %c0_i32_16 = arith.constant 0 : i32
    %25 = arith.cmpi eq, %arg2, %c0_i32_16 : i32
    %26 = arith.extui %25 : i1 to i32
    %c0_i32_17 = arith.constant 0 : i32
    %27 = arith.cmpi ne, %26, %c0_i32_17 : i32
    scf.if %27 {
      %c0_18 = arith.constant 0 : index
      %28 = memref.load %arg3[%c0_18] : memref<3xf32, #tpu.memory_space<smem>>
      %c0_19 = arith.constant 0 : index
      %c0_20 = arith.constant 0 : index
      %c0_21 = arith.constant 0 : index
      %29 = vector.load %arg6[%c0_19, %c0_20, %c0_21] : memref<3x1x128xf32, #tpu.memory_space<vmem>>, vector<1x1x128xf32>
      %30 = vector.shape_cast %29 : vector<1x1x128xf32> to vector<1x128xf32>
      %31 = vector.broadcast %28 : f32 to vector<1x128xf32>
      %32 = arith.mulf %31, %30 : vector<1x128xf32>
      %c1_22 = arith.constant 1 : index
      %33 = memref.load %arg3[%c1_22] : memref<3xf32, #tpu.memory_space<smem>>
      %c1_23 = arith.constant 1 : index
      %c0_24 = arith.constant 0 : index
      %c0_25 = arith.constant 0 : index
      %34 = vector.load %arg6[%c1_23, %c0_24, %c0_25] : memref<3x1x128xf32, #tpu.memory_space<vmem>>, vector<1x1x128xf32>
      %35 = vector.shape_cast %34 : vector<1x1x128xf32> to vector<1x128xf32>
      %36 = vector.broadcast %33 : f32 to vector<1x128xf32>
      %37 = arith.mulf %36, %35 : vector<1x128xf32>
      %38 = arith.addf %32, %37 : vector<1x128xf32>
      %c2_26 = arith.constant 2 : index
      %39 = memref.load %arg3[%c2_26] : memref<3xf32, #tpu.memory_space<smem>>
      %c2_27 = arith.constant 2 : index
      %c0_28 = arith.constant 0 : index
      %c0_29 = arith.constant 0 : index
      %40 = vector.load %arg6[%c2_27, %c0_28, %c0_29] : memref<3x1x128xf32, #tpu.memory_space<vmem>>, vector<1x1x128xf32>
      %41 = vector.shape_cast %40 : vector<1x1x128xf32> to vector<1x128xf32>
      %42 = vector.broadcast %39 : f32 to vector<1x128xf32>
      %43 = arith.mulf %42, %41 : vector<1x128xf32>
      %44 = arith.addf %38, %43 : vector<1x128xf32>
      %c0_30 = arith.constant 0 : index
      %c0_31 = arith.constant 0 : index
      %45 = vector.load %arg7[%c0_30, %c0_31] : memref<8x128xf32, #tpu.memory_space<vmem>>, vector<8x128xf32>
      %46 = vector.broadcast %44 : vector<1x128xf32> to vector<8x128xf32>
      %47 = arith.addf %45, %46 : vector<8x128xf32>
      %c0_32 = arith.constant 0 : index
      %c0_33 = arith.constant 0 : index
      %48 = vector.load %arg7[%c0_32, %c0_33] : memref<8x128xf32, #tpu.memory_space<vmem>>, vector<8x128xf32>
      tpu.vector_store %arg7[%c0_32, %c0_33], %47 {strides = array<i32>} : memref<8x128xf32, #tpu.memory_space<vmem>>, vector<8x128xf32>,
    } else {
    }
    return
  }
  func.func @transform_0(%arg0: i32, %arg1: i32, %arg2: i32) -> i32 {
    %c0_i32 = arith.constant 0 : i32
    %c0_i32_0 = arith.constant 0 : i32
    return %c0_i32 : i32
  }
  func.func @transform_1(%arg0: i32, %arg1: i32, %arg2: i32) -> (i32, i32) {
    %c0_i32 = arith.constant 0 : i32
    return %arg0, %arg2 : i32, i32
  }
  func.func @transform_2(%arg0: i32, %arg1: i32, %arg2: i32) -> (i32, i32, i32) {
    %c0_i32 = arith.constant 0 : i32
    %c0_i32_0 = arith.constant 0 : i32
    return %c0_i32, %arg2, %arg1 : i32, i32, i32
  }
  func.func @transform_3(%arg0: i32, %arg1: i32, %arg2: i32) -> (i32, i32, i32) {
    %c0_i32 = arith.constant 0 : i32
    %c0_i32_0 = arith.constant 0 : i32
    %c0_i32_1 = arith.constant 0 : i32
    return %c0_i32, %c0_i32_0, %arg1 : i32, i32, i32
  }
  func.func @transform_4(%arg0: i32, %arg1: i32, %arg2: i32) -> (i32, i32) {
    %c0_i32 = arith.constant 0 : i32
    return %arg0, %arg1 : i32, i32
  }
}

</mosaic_0001>

<bundles_post_ra>
// kernel: tpu_custom_call.1
= control target key start
LH: loop header
LB: loop body
LE: loop exit
PB: predicated region body
PF: predicated region fallthrough
CT: control target
= control target key end

     0   :  { %9 = vsyncpa [#allocation5], 0  ;;  %s521_s0 = inlined_call_operand.hbm [shape: f32[3], index: 0, kind: input, shape index: {}]   ;;  %s522_s1 = inlined_call_operand.hbm [shape: f32[8,128], index: 1, kind: input, shape index: {}]   ;;  %s523_s2 = inlined_call_operand.hbm [shape: f32[3,128,128], index: 2, kind: input, shape index: {}]   ;;  %s524_s3 = inlined_call_operand.hbm [shape: f32[3,1,128], index: 3, kind: input, shape index: {}]   ;;  %s525_s4 = inlined_call_operand.hbm [shape: f32[8,128], index: 4, kind: output, shape index: {}]  }
   0x1   :  { %10 = vsyncpa [#allocation3], 0 }
   0x2   :  { %11 = vsyncpa [#allocation8], 0  ;;  %s37_s17 = sshll.u32 %s523_s2, 4  ;;  %s38_s17 = int_to_ptr.hbm [resolvable:$true] %s37_s17 }
   0x3   :  { %12 = vsyncpa [#allocation4], 0  ;;  %s415_s18 = smov [#allocation7]   ;;  %s18_s22 = sshll.u32 %s521_s0, 4  ;;  %s19_s22 = int_to_ptr.hbm [resolvable:$true] %s18_s22 }
   0x4   :  { %s39_s19 = sshll.u32 %s415_s18, 4  ;;  %s416_s23 = smov 128   ;;  %s40_s19 = int_to_ptr.vmem [resolvable:$true] %s39_s19 }
   0x5   :  { %s417_s24 = smov 8   ;;  %s418_s25 = smov [#allocation2]  }
   0x6   :  { %45 = dma.hbm_to_vmem [thread:$0]  %s38_s17, 6144, %s40_s19, [#allocation8], %s416_s23, %s416_s23, %s417_s24  }
   0x7   :  { %21 = dma.hbm_to_smem %s19_s22, 16, %s418_s25, [#allocation5]  }
   0x8   :  { %s27_s28 = sshll.u32 %s522_s1, 4  ;;  %s419_s2 = smov [#allocation6]   ;;  %s28_s28 = int_to_ptr.hbm [resolvable:$true] %s27_s28 }
   0x9   :  { %s29_s29 = sshll.u32 %s419_s2, 4  ;;  %s50_s6 = sshll.u32 %s524_s3, 4  ;;  %s30_s29 = int_to_ptr.vmem [resolvable:$true] %s29_s29  ;;  %s51_s6 = int_to_ptr.hbm [resolvable:$true] %s50_s6 }
   0xa   :  { %32 = dma.hbm_to_vmem [thread:$0]  %s28_s28, 128, %s30_s29, [#allocation3]  }
   0xb   :  { %s420_s0 = smov [#allocation9]   ;;  %s421_s8 = smov 16  }
   0xc   :  { %s52_s7 = sshll.u32 %s420_s0, 4  ;;  %s422_s9 = smov 1   ;;  %s53_s7 = int_to_ptr.vmem [resolvable:$true] %s52_s7 }
   0xd   :  { %58 = dma.hbm_to_vmem [thread:$0]  %s51_s6, 48, %s53_s7, [#allocation8], %s421_s8, %s421_s8, %s422_s9  }
   0xe   :  { %407 = dma.done.wait [#allocation5], 16  }
   0xf   :  { %408 = vsyncadd [#allocation5], 4294967280 }
  0x10   :  { %409 = dma.done.wait [#allocation3], 128  }
  0x11   :  { %410 = vsyncadd [#allocation3], 4294967168 }
  0x12   :  { %411 = dma.done.wait [#allocation8], 6192  }
  0x13   :  { %412 = vsyncadd [#allocation8], 4294961104 }
  0x14   :  { %75 = sfence }
  0x15   :  { %s81_s1 = sld [smem:[#allocation2]]  ;;  %v97_v0 = vld [vmem:[#allocation7 + $0x78] sm:$0xff]  ;;  %v96_v2 = vld [vmem:[#allocation7 + $0x70] sm:$0xff]  ;;  %v95_v3 = vld [vmem:[#allocation7 + $0x68] sm:$0xff]  ;;  %s423_s3 = smov [#allocation10]  }
  0x16   :  { %s285_s10 = sld [smem:[#allocation2 + $0x1]]  ;;  %v132_v1 = vld [vmem:[#allocation7 + $0xf8] sm:$0xff]  ;;  %v131_v5 = vld [vmem:[#allocation7 + $0xf0] sm:$0xff]  ;;  %v130_v6 = vld [vmem:[#allocation7 + $0xe8] sm:$0xff]  ;;  %s271_s12 = sshll.u32 %s423_s3, 4  ;;  %s272_s12 = int_to_ptr.vmem [resolvable:$true] %s271_s12 }
  0x17   :  { %s286_s11 = sld [smem:[#allocation2 + $0x2]]  ;;  %v183_v4 = vld [vmem:[#allocation7 + $0x178] sm:$0xff]  ;;  %v182_v8 = vld [vmem:[#allocation7 + $0x170] sm:$0xff]  ;;  %v181_v9 = vld [vmem:[#allocation7 + $0x168] sm:$0xff]  ;;  %s273_s15 = sshll.u32 %s525_s4, 4  ;;  %s274_s15 = int_to_ptr.hbm [resolvable:$true] %s273_s15 }
  0x18   :  { %v94_v10 = vld [vmem:[#allocation7 + $0x60] sm:$0xff]  ;;  %v93_v20 = vld [vmem:[#allocation7 + $0x58] sm:$0xff]  ;;  %v92_v32 = vld [vmem:[#allocation7 + $0x50] sm:$0xff] }
  0x19   :  { %v129_v15 = vld [vmem:[#allocation7 + $0xe0] sm:$0xff]  ;;  %v128_v21 = vld [vmem:[#allocation7 + $0xd8] sm:$0xff]  ;;  %v127_v33 = vld [vmem:[#allocation7 + $0xd0] sm:$0xff] }
  0x1a   :  { %v180_v26 = vld [vmem:[#allocation7 + $0x160] sm:$0xff]  ;;  %v179_v31 = vld [vmem:[#allocation7 + $0x158] sm:$0xff]  ;;  %v91_v36 = vld [vmem:[#allocation7 + $0x48] sm:$0xff] }
  0x1b   :  { %v461_v7 = vstv %s81_s1  ;;  %v126_v37 = vld [vmem:[#allocation7 + $0xc8] sm:$0xff]  ;;  %v178_v42 = vld [vmem:[#allocation7 + $0x150] sm:$0xff]  ;;  %v90_v46 = vld [vmem:[#allocation7 + $0x40] sm:$0xff] }
  0x1c   :  { %v114_v11 = vmul.f32 %v461_v7, %v97_v0  ;;  %v464_v12 = vstv %s285_s10  ;;  %v113_v13 = vmul.f32 %v461_v7, %v96_v2  ;;  %v112_v14 = vmul.f32 %v461_v7, %v95_v3  ;;  %v125_v47 = vld [vmem:[#allocation7 + $0xc0] sm:$0xff]  ;;  %v177_v52 = vld [vmem:[#allocation7 + $0x148] sm:$0xff]  ;;  %v89_v54 = vld [vmem:[#allocation7 + $0x38] sm:$0xff] }
  0x1d   :  { %v149_v16 = vmul.f32 %v464_v12, %v132_v1  ;;  %v469_v17 = vstv %s286_s11  ;;  %v148_v18 = vmul.f32 %v464_v12, %v131_v5  ;;  %v147_v19 = vmul.f32 %v464_v12, %v130_v6  ;;  %v124_v55 = vld [vmem:[#allocation7 + $0xb8] sm:$0xff]  ;;  %v176_v60 = vld [vmem:[#allocation7 + $0x140] sm:$0xff]  ;;  %v88_v62 = vld [vmem:[#allocation7 + $0x30] sm:$0xff] }
  0x1e   :  { %v200_v22 = vmul.f32 %v469_v17, %v183_v4  ;;  %v199_v23 = vmul.f32 %v469_v17, %v182_v8  ;;  %v198_v24 = vmul.f32 %v469_v17, %v181_v9  ;;  %v111_v25 = vmul.f32 %v461_v7, %v94_v10  ;;  %v123_v63 = vld [vmem:[#allocation7 + $0xb0] sm:$0xff]  ;;  %v175_v4 = vld [vmem:[#allocation7 + $0x138] sm:$0xff]  ;;  %v87_v6 = vld [vmem:[#allocation7 + $0x28] sm:$0xff] }
  0x1f   :  { %v165_v27 = vadd.f32 %v149_v16, %v114_v11  ;;  %v164_v28 = vadd.f32 %v148_v18, %v113_v13  ;;  %v163_v29 = vadd.f32 %v147_v19, %v112_v14  ;;  %v146_v30 = vmul.f32 %v464_v12, %v129_v15  ;;  %v122_v8 = vld [vmem:[#allocation7 + $0xa8] sm:$0xff]  ;;  %v174_v14 = vld [vmem:[#allocation7 + $0x130] sm:$0xff]  ;;  %v86_v16 = vld [vmem:[#allocation7 + $0x20] sm:$0xff] }
  0x20   :  { %v110_v34 = vmul.f32 %v461_v7, %v93_v20  ;;  %v145_v35 = vmul.f32 %v464_v12, %v128_v21  ;;  %v197_v41 = vmul.f32 %v469_v17, %v180_v26  ;;  %v196_v43 = vmul.f32 %v469_v17, %v179_v31  ;;  %v121_v18 = vld [vmem:[#allocation7 + $0xa0] sm:$0xff]  ;;  %v120_v26 = vld [vmem:[#allocation7 + $0x98] sm:$0xff] }
  0x21   :  { %v216_v38 = vadd.f32 %v200_v22, %v165_v27  ;;  %v215_v39 = vadd.f32 %v199_v23, %v164_v28  ;;  %v162_v40 = vadd.f32 %v146_v30, %v111_v25  ;;  %v109_v44 = vmul.f32 %v461_v7, %v92_v32  ;;  %v173_v23 = vld [vmem:[#allocation7 + $0x128] sm:$0xff]  ;;  %v85_v25 = vld [vmem:[#allocation7 + $0x18] sm:$0xff]  ;;  %v172_v31 = vld [vmem:[#allocation7 + $0x120] sm:$0xff] }
  0x22   :  { %v144_v45 = vmul.f32 %v464_v12, %v127_v33  ;;  %v214_v48 = vadd.f32 %v198_v24, %v163_v29  ;;  %v161_v49 = vadd.f32 %v145_v35, %v110_v34  ;;  %v108_v50 = vmul.f32 %v461_v7, %v91_v36  ;;  %v84_v33 = vld [vmem:[#allocation7 + $0x10] sm:$0xff] }
  0x23   :  { %219 = vmatpush.msra.mxu0 %v216_v38  ;;  %v143_v51 = vmul.f32 %v464_v12, %v126_v37  ;;  %v195_v53 = vmul.f32 %v469_v17, %v178_v42  ;;  %v213_v56 = vadd.f32 %v197_v41, %v162_v40  ;;  %v107_v58 = vmul.f32 %v461_v7, %v90_v46  ;;  %v119_v34 = vld [vmem:[#allocation7 + $0x90] sm:$0xff]  ;;  %v83_v41 = vld [vmem:[#allocation7 + $0x8] sm:$0xff] }
  0x24   :  { %v160_v57 = vadd.f32 %v144_v45, %v109_v44  ;;  %v142_v59 = vmul.f32 %v464_v12, %v125_v47  ;;  %v194_v61 = vmul.f32 %v469_v17, %v177_v52  ;;  %v212_v0 = vadd.f32 %v196_v43, %v161_v49  ;;  %v118_v42 = vld [vmem:[#allocation7 + $0x88] sm:$0xff]  ;;  %v170_v47 = vld [vmem:[#allocation7 + $0x110] sm:$0xff]  ;;  %v82_v49 = vld [vmem:[#allocation7] sm:$0xff] }
  0x25   :  { %220 = vmatpush.msra.mxu0 %v215_v39  ;;  %v159_v1 = vadd.f32 %v143_v51, %v108_v50  ;;  %v106_v2 = vmul.f32 %v461_v7, %v89_v54  ;;  %v141_v3 = vmul.f32 %v464_v12, %v124_v55  ;;  %v193_v5 = vmul.f32 %v469_v17, %v176_v60  ;;  %v171_v39 = vld [vmem:[#allocation7 + $0x118] sm:$0xff]  ;;  %v117_v50 = vld [vmem:[#allocation7 + $0x80] sm:$0xff] }
  0x26   :  { %v211_v9 = vadd.f32 %v195_v53, %v160_v57  ;;  %v158_v10 = vadd.f32 %v142_v59, %v107_v58  ;;  %v105_v11 = vmul.f32 %v461_v7, %v88_v62  ;;  %v140_v13 = vmul.f32 %v464_v12, %v123_v63 }
  0x27   :  { %221 = vmatpush.msra.mxu0 %v214_v48  ;;  %v192_v15 = vmul.f32 %v469_v17, %v175_v4  ;;  %v210_v19 = vadd.f32 %v194_v61, %v159_v1  ;;  %v157_v20 = vadd.f32 %v141_v3, %v106_v2  ;;  %v104_v21 = vmul.f32 %v461_v7, %v87_v6  ;;  %v168_v61 = vld [vmem:[#allocation7 + $0x100] sm:$0xff]  ;;  %v218_v6 = vld [vmem:[#allocation6] sm:$0xff] }
  0x28   :  { %v139_v22 = vmul.f32 %v464_v12, %v122_v8  ;;  %v191_v24 = vmul.f32 %v469_v17, %v174_v14  ;;  %v209_v27 = vadd.f32 %v193_v5, %v158_v10  ;;  %v156_v28 = vadd.f32 %v140_v13, %v105_v11  ;;  %v245_v8 = vld [vmem:[#allocation9] sm:$0x1]  ;;  %v256_v13 = vld [vmem:[#allocation9 + $0x2] sm:$0x1] }
  0x29   :  { %222 = vmatpush.msra.mxu0 %v213_v56  ;;  %v103_v29 = vmul.f32 %v461_v7, %v86_v16  ;;  %v138_v30 = vmul.f32 %v464_v12, %v121_v18  ;;  %v190_v32 = vmul.f32 %v469_v17, %v173_v23  ;;  %v208_v35 = vadd.f32 %v192_v15, %v157_v20  ;;  %v169_v56 = vld [vmem:[#allocation7 + $0x108] sm:$0xff] }
  0x2a   :  { %v155_v36 = vadd.f32 %v139_v22, %v104_v21  ;;  %v102_v37 = vmul.f32 %v461_v7, %v85_v25  ;;  %v137_v38 = vmul.f32 %v464_v12, %v120_v26  ;;  %v189_v40 = vmul.f32 %v469_v17, %v172_v31 }
  0x2b   :  { %223 = vmatpush.msra.mxu0 %v212_v0  ;;  %v207_v43 = vadd.f32 %v191_v24, %v156_v28  ;;  %v154_v44 = vadd.f32 %v138_v30, %v103_v29  ;;  %v101_v45 = vmul.f32 %v461_v7, %v84_v33  ;;  %v136_v46 = vmul.f32 %v464_v12, %v119_v34 }
  0x2c   :  { %v188_v48 = vmul.f32 %v469_v17, %v171_v39  ;;  %v206_v51 = vadd.f32 %v190_v32, %v155_v36  ;;  %v153_v52 = vadd.f32 %v137_v38, %v102_v37  ;;  %v100_v53 = vmul.f32 %v461_v7, %v83_v41 }
  0x2d   :  { %224 = vmatpush.msra.mxu0 %v211_v9  ;;  %v135_v54 = vmul.f32 %v464_v12, %v118_v42  ;;  %v187_v55 = vmul.f32 %v469_v17, %v170_v47  ;;  %v205_v57 = vadd.f32 %v189_v40, %v154_v44  ;;  %v152_v58 = vadd.f32 %v136_v46, %v101_v45  ;;  %v250_v9 = vld [vmem:[#allocation9 + $0x1] sm:$0x1] }
  0x2e   :  { %v99_v59 = vmul.f32 %v461_v7, %v82_v49  ;;  %v134_v60 = vmul.f32 %v464_v12, %v117_v50  ;;  %v204_v62 = vadd.f32 %v188_v48, %v153_v52  ;;  %v186_v0 = vmul.f32 %v469_v17, %v169_v56 }
  0x2f   :  { %225 = vmatpush.msra.mxu0 %v210_v19  ;;  %v151_v63 = vadd.f32 %v135_v54, %v100_v53  ;;  %v203_v1 = vadd.f32 %v187_v55, %v152_v58  ;;  %v185_v3 = vmul.f32 %v469_v17, %v168_v61  ;;  %v247_v10 = vmul.f32 %v245_v8, %v461_v7 }
  0x30   :  { %v150_v2 = vadd.f32 %v134_v60, %v99_v59  ;;  %v252_v11 = vmul.f32 %v250_v9, %v464_v12  ;;  %v258_v15 = vmul.f32 %v256_v13, %v469_v17 }
  0x31   :  { %226 = vmatpush.msra.mxu0 %v209_v27  ;;  %v202_v4 = vadd.f32 %v186_v0, %v151_v63 }
  0x32   :  { %v201_v5 = vadd.f32 %v185_v3, %v150_v2  ;;  %v253_v14 = vadd.f32 %v252_v11, %v247_v10 }
  0x33   :  { %227 = vmatpush.msra.mxu0 %v208_v35 }
  0x34   :  { %v259_v16 = vadd.f32 %v258_v15, %v253_v14 }
  0x35   :  { %228 = vmatpush.msra.mxu0 %v207_v43 }
  0x36   :  { %v262_v18 = vperm.slane %v259_v16, 0 }
  0x37   :  { %229 = vmatpush.msra.mxu0 %v206_v51 }
  0x39   :  { %230 = vmatpush.msra.mxu0 %v205_v57 }
  0x3b   :  { %231 = vmatpush.msra.mxu0 %v204_v62 }
  0x3d   :  { %232 = vmatpush.msra.mxu0 %v203_v1 }
  0x3f   :  { %233 = vmatpush.msra.mxu0 %v202_v4 }
  0x41   :  { %234 = vmatpush.msra.mxu0 %v201_v5 }
  0x42   :  { %235 = vmatmul.f32.vlgmr.msra.gmra.mxu0 %v218_v6 }
  0xbf   :  { %v236_v19 = vpop.f32.mrf.mxu0 }
  0xc0   :  { %v264_v20 = vadd.f32 %v262_v18, %v236_v19 }
  0xc2   :  { %265 = vst [vmem:[#allocation10] sm:$0xff] %v264_v20 }
  0xc3   :  { %276 = dma.vmem_to_hbm [thread:$0]  %s272_s12, 128, %s274_s15, [#allocation4]  }
  0xc4   :  { %413 = dma.done.wait [#allocation4], 128  }
  0xc5   :  { %414 = vsyncadd [#allocation4], 4294967168 }
  0xc6   :  { %281 = vsyncpa [#allocation3], 1 }
  0xc7   :  { %282 = vsyncpa [#allocation8], 1 }
  0xc8   :  { %283 = vsyncpa [#allocation4], 1 }
  0xc9   :  { %284 = vsyncpa [#allocation5], 1 }

</bundles_post_ra>
